<compile_context>
chip_gen: v5e
topology: v5e:2x2
jax: 0.10.0
libtpu: 0.0.40
codegen_flags: <defaults>
</compile_context>

<pallas_src>
import math

import jax
import jax.numpy as jnp
from jax.experimental import pallas as pl
from jax.experimental.pallas import tpu as pltpu


def _round_up(x: int, m: int) -> int:
    return (x + m - 1) // m * m


def _choose_block_tokens(T: int, D: int, itemsize: int) -> int:
    """Pick a sublane-dense token block size that keeps VMEM buffers modest."""
    # ~6 MiB per (TT, D) buffer budget (double-buffered scratch + output block
    # must also fit the 64 MiB v7x VMEM with headroom).
    rows_budget = max(8, ((6 * 2**20) // max(1, D * itemsize)) // 8 * 8)
    return max(8, min(256, _round_up(T, 8), rows_budget))


# ---------------------------------------------------------------------------
# Path 1: VMEM-resident table, one-hot MXU gather, TT tokens per grid step.
# ---------------------------------------------------------------------------
def _embed_resident(flat_ids, lut, TT, G, scale):
    vocab, D = lut.shape
    T_pad = G * TT
    itemsize = jnp.dtype(lut.dtype).itemsize
    ids2d = flat_ids.reshape(T_pad, 1)  # token index on sublanes

    def kernel(ids_ref, lut_ref, out_ref):
        ids = ids_ref[...]  # (TT, 1) int32
        iota = jax.lax.broadcasted_iota(jnp.int32, (TT, vocab), 1)
        onehot = (ids == iota).astype(lut_ref.dtype)  # (TT, vocab)
        out_ref[...] = (
            jnp.dot(onehot, lut_ref[...], preferred_element_type=jnp.float32)
            * scale
        ).astype(out_ref.dtype)

    vmem_needed = (
        2 * (TT * 128 * 4 + TT * D * itemsize) + 2 * vocab * D * itemsize
    )
    vmem_limit = int(min(48 * 2**20, max(16 * 2**20, 2 * vmem_needed)))
    cost = pl.CostEstimate(
        flops=2 * T_pad * vocab * D + T_pad * D,
        transcendentals=0,
        bytes_accessed=T_pad * 4 + vocab * D * itemsize + T_pad * D * itemsize,
    )

    return pl.pallas_call(
        kernel,
        out_shape=jax.ShapeDtypeStruct((T_pad, D), lut.dtype),
        grid_spec=pltpu.PrefetchScalarGridSpec(
            num_scalar_prefetch=0,
            grid=(G,),
            in_specs=[
                pl.BlockSpec((TT, 1), lambda i: (i, 0)),       # ids block
                pl.BlockSpec((vocab, D), lambda i: (0, 0)),    # resident LUT
            ],
            out_specs=pl.BlockSpec((TT, D), lambda i: (i, 0)),
        ),
        compiler_params=pltpu.CompilerParams(
            dimension_semantics=("parallel",),   # disjoint output blocks
            vmem_limit_bytes=vmem_limit,
        ),
        cost_estimate=cost,
    )(ids2d, lut)


# ---------------------------------------------------------------------------
# Path 2: HBM table, per-row DMA gather with TT copies in flight,
#         double-buffered across token blocks.
# ---------------------------------------------------------------------------
def _embed_dma_gather(flat_ids, lut, TT, G, scale):
    vocab, D = lut.shape
    T_pad = G * TT
    itemsize = jnp.dtype(lut.dtype).itemsize

    def kernel(ids_ref, lut_hbm, out_ref, buf, sems):
        g = pl.program_id(0)
        ng = pl.num_programs(0)
        slot = g % 2

        def start_fetch(block, slot_):
            def body(r, carry):
                row = ids_ref[block * TT + r]
                pltpu.make_async_copy(
                    lut_hbm.at[pl.ds(row, 1), :],
                    buf.at[slot_, pl.ds(r, 1), :],
                    sems.at[slot_, r],
                ).start()
                return carry

            jax.lax.fori_loop(0, TT, body, 0)

        # Prime the pipeline on the very first step.
        @pl.when(g == 0)
        def _():
            start_fetch(0, 0)

        # Prefetch the next token block into the other slot.
        @pl.when(g + 1 < ng)
        def _():
            start_fetch(g + 1, 1 - slot)

        # Wait for this block's TT row copies.
        def wait_body(r, carry):
            pltpu.make_async_copy(
                lut_hbm.at[pl.ds(0, 1), :],
                buf.at[slot, pl.ds(r, 1), :],
                sems.at[slot, r],
            ).wait()
            return carry

        jax.lax.fori_loop(0, TT, wait_body, 0)

        out_ref[...] = (buf[slot] * scale).astype(out_ref.dtype)

    vmem_needed = 4 * TT * D * itemsize + 2 * TT * 128 * 4
    vmem_limit = int(min(48 * 2**20, max(16 * 2**20, 2 * vmem_needed)))
    cost = pl.CostEstimate(
        flops=T_pad * D,
        transcendentals=0,
        bytes_accessed=T_pad * 4 + 2 * T_pad * D * itemsize,
    )

    return pl.pallas_call(
        kernel,
        out_shape=jax.ShapeDtypeStruct((T_pad, D), lut.dtype),
        grid_spec=pltpu.PrefetchScalarGridSpec(
            num_scalar_prefetch=1,                      # flat ids -> SMEM
            grid=(G,),
            in_specs=[pl.BlockSpec(memory_space=pl.ANY)],  # LUT stays in HBM
            out_specs=pl.BlockSpec((TT, D), lambda i, ids: (i, 0)),
            scratch_shapes=[
                pltpu.VMEM((2, TT, D), lut.dtype),
                pltpu.SemaphoreType.DMA((2, TT)),
            ],
        ),
        compiler_params=pltpu.CompilerParams(
            # double-buffering carries state across steps -> must be sequential
            dimension_semantics=("arbitrary",),
            vmem_limit_bytes=vmem_limit,
        ),
        cost_estimate=cost,
    )(flat_ids, lut)


def word_embedding_forward(token_ids: jax.Array, lut: jax.Array,
                           *, block_tokens: int | None = None,
                           force_dma_gather: bool = False) -> jax.Array:
    """Equivalent of `nn.Embedding(vocab, n_units)(x) * sqrt(n_units)`."""
    B, S = token_ids.shape
    vocab, D = lut.shape
    scale = math.sqrt(D)
    itemsize = jnp.dtype(lut.dtype).itemsize

    # Bounds safety: clamp ids before any gather (review correctness concern).
    flat = jnp.clip(token_ids.reshape(-1).astype(jnp.int32), 0, vocab - 1)
    T = flat.shape[0]

    TT = (_choose_block_tokens(T, D, itemsize) if block_tokens is None
          else _round_up(block_tokens, 8))
    T_pad = _round_up(T, TT)
    G = T_pad // TT
    if T_pad != T:
        flat = jnp.pad(flat, (0, T_pad - T))   # pad with id 0 (already valid)

    small_table = (vocab * D * itemsize <= 4 * 2**20) and (vocab <= 2048)
    if small_table and not force_dma_gather:
        out_flat = _embed_resident(flat, lut, TT, G, scale)
    else:
        out_flat = _embed_dma_gather(flat, lut, TT, G, scale)

    return out_flat[:T].reshape(B, S, D)


if __name__ == "__main__":
    # Small, deterministic setup consistent with WordEmbedding(n_units, vocab)
    vocab = 50
    n_units = 128
    batch, seq = 2, 8

    key = jax.random.PRNGKey(0)
    k_lut, k_ids = jax.random.split(key)

    # nn.Embedding default init: N(0, 1)
    lut = jax.random.normal(k_lut, (vocab, n_units), dtype=jnp.float32)
    token_ids = jax.random.randint(k_ids, (batch, seq), 0, vocab, dtype=jnp.int32)

    ref = jnp.take(lut, token_ids, axis=0) * math.sqrt(n_units)

    # Fast path (VMEM-resident table, TT tokens per step).
    out_fast = jax.block_until_ready(word_embedding_forward(token_ids, lut))
    assert out_fast.shape == (batch, seq, n_units)
    assert jnp.allclose(out_fast, ref, atol=1e-5, rtol=1e-5)

    # Large-table path (manual double-buffered DMA gather), forced on the same
    # small inputs to validate correctness.
    out_dma = jax.block_until_ready(
        word_embedding_forward(token_ids, lut, force_dma_gather=True))
    assert jnp.allclose(out_dma, ref, atol=1e-5, rtol=1e-5)

    print("KERNEL_OK")
</pallas_src>

<mosaic_0001>
module attributes {stable_mosaic.version = 11 : i64} {
  func.func @kernel(%arg0: i32, %arg1: memref<16x1xi32, #tpu.memory_space<vmem>>, %arg2: memref<50x128xf32, #tpu.memory_space<vmem>>, %arg3: memref<16x128xf32, #tpu.memory_space<vmem>>) attributes {dimension_semantics = [#tpu.dimension_semantics<parallel>], iteration_bounds = array<i64: 1>, scalar_prefetch = 0 : i64, scratch_operands = 0 : i64, tpu.core_type = #tpu.core_type<tc>, window_params = [{transform_indices = @transform_0, window_bounds = array<i64: 16, 1>}, {pipeline_mode = #tpu.pipeline_mode<synchronous>, transform_indices = @transform_1, window_bounds = array<i64: 50, 128>}, {transform_indices = @transform_2, window_bounds = array<i64: 16, 128>}]} {
    %c0 = arith.constant 0 : index
    %c0_0 = arith.constant 0 : index
    %0 = vector.load %arg1[%c0, %c0_0] : memref<16x1xi32, #tpu.memory_space<vmem>>, vector<16x1xi32>
    %1 = tpu.iota {dimensions = array<i32: 1>} : vector<16x50xi32>
    %2 = vector.broadcast %0 : vector<16x1xi32> to vector<16x50xi32>
    %3 = arith.cmpi eq, %2, %1 : vector<16x50xi32>
    %4 = arith.extui %3 : vector<16x50xi1> to vector<16x50xi32>
    %5 = arith.sitofp %4 : vector<16x50xi32> to vector<16x50xf32>
    %c0_1 = arith.constant 0 : index
    %c0_2 = arith.constant 0 : index
    %6 = vector.load %arg2[%c0_1, %c0_2] : memref<50x128xf32, #tpu.memory_space<vmem>>, vector<50x128xf32>
    %cst = arith.constant dense<0.000000e+00> : vector<16x128xf32>
    %7 = tpu.matmul %5, %6, %cst {dimension_numbers = #tpu.dot_dimension_numbers<[1], [0], [0], [1], [0, 0, 1, 1], [], []>} : vector<16x50xf32>, vector<50x128xf32>, vector<16x128xf32> -> vector<16x128xf32>
    %cst_3 = arith.constant 11.3137083 : f32
    %8 = vector.broadcast %cst_3 : f32 to vector<16x128xf32>
    %9 = arith.mulf %7, %8 : vector<16x128xf32>
    %c0_4 = arith.constant 0 : index
    %c0_5 = arith.constant 0 : index
    %10 = vector.load %arg3[%c0_4, %c0_5] : memref<16x128xf32, #tpu.memory_space<vmem>>, vector<16x128xf32>
    tpu.vector_store %arg3[%c0_4, %c0_5], %9 {strides = array<i32>} : memref<16x128xf32, #tpu.memory_space<vmem>>, vector<16x128xf32>,
    return
  }
  func.func @transform_0(%arg0: i32) -> (i32, i32) {
    %c0_i32 = arith.constant 0 : i32
    %c0_i32_0 = arith.constant 0 : i32
    return %arg0, %c0_i32 : i32, i32
  }
  func.func @transform_1(%arg0: i32) -> (i32, i32) {
    %c0_i32 = arith.constant 0 : i32
    %c0_i32_0 = arith.constant 0 : i32
    %c0_i32_1 = arith.constant 0 : i32
    return %c0_i32, %c0_i32_0 : i32, i32
  }
  func.func @transform_2(%arg0: i32) -> (i32, i32) {
    %c0_i32 = arith.constant 0 : i32
    %c0_i32_0 = arith.constant 0 : i32
    return %arg0, %c0_i32 : i32, i32
  }
}

</mosaic_0001>

<bundles_post_ra>
// kernel: tpu_custom_call.1
= control target key start
LH: loop header
LB: loop body
LE: loop exit
PB: predicated region body
PF: predicated region fallthrough
CT: control target
= control target key end

     0   :  { %7 = vsyncpa [#allocation3], 0  ;;  %s218_s0 = inlined_call_operand.vmem [shape: s32[16,1], index: 0, kind: input, shape index: {}]   ;;  %s219_s1 = inlined_call_operand.hbm [shape: f32[50,128], index: 1, kind: input, shape index: {}]   ;;  %s220_s2 = inlined_call_operand.hbm [shape: f32[16,128], index: 2, kind: output, shape index: {}]  }
   0x1   :  { %8 = vsyncpa [#allocation4], 0  ;;  %s15_s11 = sshll.u32 %s219_s1, 4  ;;  %s179_s12 = smov [#allocation2]   ;;  %s16_s11 = int_to_ptr.hbm [resolvable:$true] %s15_s11 }
   0x2   :  { %s17_s13 = sshll.u32 %s179_s12, 4  ;;  %s180_s14 = smov 128   ;;  %s18_s13 = int_to_ptr.vmem [resolvable:$true] %s17_s13 }
   0x3   :  { %s181_s15 = smov 8  }
   0x4   :  { %23 = dma.hbm_to_vmem [thread:$0]  %s16_s11, 896, %s18_s13, [#allocation3], %s180_s14, %s180_s14, %s181_s15  }
   0x5   :  { %175 = dma.done.wait [#allocation3], 896  }
   0x6   :  { %176 = vsyncadd [#allocation3], 4294966400  ;;  %v182_v0 = vmov 0   ;;  %vm58_vm0 = vcmask 1041408   ;;  %v28_v1 = vld [vmem:[%s218_s0] sm:$0xff]  ;;  %v49_v3 = vld [vmem:[#allocation2 + $0x28] sm:$0xff]  ;;  %v30_v10 = vlaneseq }
   0x7   :  { %126 = vset.pattern.permute.xlu0 %v182_v0  ;;  %v50_v2 = vld [vmem:[#allocation2 + $0x30] sm:$0x3]  ;;  %v48_v4 = vld [vmem:[#allocation2 + $0x20] sm:$0xff]  ;;  %v47_v5 = vld [vmem:[#allocation2 + $0x18] sm:$0xff]  ;;  %vm51_vm1 = vcmask 408576   ;;  %v183_v13 = vmov 0.0  }
   0x8   :  { %33 = vperm.xlu0 %126, %v28_v1   ;;  %110 = vmatpush.msk.msra.mxu0 %vm58_vm0, %v50_v2  ;;  %v29_v6 = vld [vmem:[%s218_s0 + $0x8] sm:$0xff]  ;;  %v46_v7 = vld [vmem:[#allocation2 + $0x10] sm:$0xff]  ;;  %v44_v9 = vld [vmem:[#allocation2] sm:$0xff]  ;;  %v31_v11 = vand.u32 127, %v30_v10  ;;  %s184_s0 = smov [#allocation5]   ;;  %s95_s22 = sshll.u32 %s220_s2, 4  ;;  %s96_s22 = int_to_ptr.hbm [resolvable:$true] %s95_s22 }
   0x9   :  { %113 = vmatpush.msk.msra.mxu1 %vm58_vm0, %v50_v2  ;;  %v45_v8 = vld [vmem:[#allocation2 + $0x8] sm:$0xff]  ;;  %s93_s19 = sshll.u32 %s184_s0, 4  ;;  %s94_s19 = int_to_ptr.vmem [resolvable:$true] %s93_s19 }
   0xa   :  { %72 = vmatpush.msra.mxu0 %v49_v3 }
   0xb   :  { %114 = vmatpush.msra.mxu1 %v49_v3 }
   0xc   :  { %73 = vmatpush.msra.mxu0 %v48_v4 }
   0xd   :  { %115 = vmatpush.msra.mxu1 %v48_v4 }
   0xe   :  { %74 = vmatpush.msra.mxu0 %v47_v5 }
   0xf   :  { %116 = vmatpush.msra.mxu1 %v47_v5 }
  0x10   :  { %36 = vperm.xlu0 %126, %v29_v6   ;;  %75 = vmatpush.msra.mxu0 %v46_v7 }
  0x11   :  { %117 = vmatpush.msra.mxu1 %v46_v7 }
  0x12   :  { %76 = vmatpush.msra.mxu0 %v45_v8 }
  0x13   :  { %118 = vmatpush.msra.mxu1 %v45_v8 }
  0x14   :  { %77 = vmatpush.msra.mxu0 %v44_v9 }
  0x15   :  { %119 = vmatpush.msra.mxu1 %v44_v9 }
  0x7a   :  { %v34_v12 = vpop.permute.xlu0 %33 }
  0x7b   :  { %vm38_vm2 = vcmp.eq.s32.totalorder %v34_v12, %v31_v11 }
  0x7c   :  { %v108_v14 = vsel %vm38_vm2, 1.0, %v183_v13 }
  0x7d   :  { %111 = vmatmul.msk.f32.vlgmr.msra.gmra.mxu0 %vm51_vm1, %v108_v14 }
  0x82   :  { %v37_v15 = vpop.permute.xlu0 %36 }
  0x83   :  { %vm39_vm3 = vcmp.eq.s32.totalorder %v37_v15, %v31_v11 }
  0x84   :  { %v109_v16 = vsel %vm39_vm3, 1.0, %v183_v13 }
  0x85   :  { %112 = vmatmul.msk.f32.vlgmr.msra.gmra.mxu1 %vm51_vm1, %v109_v16 }
  0xfa   :  { %v79_v17 = vpop.f32.mrf.mxu0 }
  0xfb   :  { %v85_v18 = vmul.f32 11.313708, %v79_v17 }
  0xfd   :  { %87 = vst [vmem:[#allocation5] sm:$0xff] %v85_v18 }
 0x102   :  { %v82_v19 = vpop.f32.mrf.mxu1 }
 0x103   :  { %v86_v20 = vmul.f32 11.313708, %v82_v19 }
 0x105   :  { %88 = vst [vmem:[#allocation5 + $0x8] sm:$0xff] %v86_v20 }
 0x106   :  { %101 = dma.vmem_to_hbm [thread:$0]  %s94_s19, 256, %s96_s22, [#allocation4], %s180_s14, %s180_s14, %s181_s15  }
 0x107   :  { %177 = dma.done.wait [#allocation4], 256  }
 0x108   :  { %178 = vsyncadd [#allocation4], 4294967040 }
 0x109   :  { %106 = vsyncpa [#allocation3], 1 }
 0x10a   :  { %107 = vsyncpa [#allocation4], 1 }

</bundles_post_ra>
